<compile_context>
chip_gen: v7x
topology: tpu7x:2x2x1
jax: 0.10.0
libtpu: 0.0.40
codegen_flags: <defaults>
</compile_context>

<pallas_src>
import functools

import jax
import jax.numpy as jnp
from jax import lax
from jax.experimental import pallas as pl
from jax.experimental.pallas import tpu as pltpu

_LANE = 128
_MAX_TILE_Q = 512


def _cdiv(a, b):
    return -(-a // b)


def _round_up(x, m):
    return _cdiv(x, m) * m


def _vmem_limit_bytes():
    """Generation-aware VMEM limit: ~48 MiB on v7x (64 MiB phys), ~96 MiB on v5e/v6e."""
    cap = 64 * 1024 * 1024  # conservative fallback == v7x physical VMEM
    try:
        cap = int(pltpu.get_tpu_info().vmem_capacity_bytes)
    except Exception:
        pass
    return min((cap * 3) // 4, 100 * 1024 * 1024)


def _est_vmem_bytes(tile_q, dp, tile_h, npad, ic):
    """Rough VMEM working set.  Blocked operands are double-buffered (x2) by the
    auto-pipeliner even when their block index never changes, so 2x is budgeted
    for the resident weight / prototype blocks as well."""
    db = 2
    return (db * tile_q * dp * ic          # query tile
            + db * dp * tile_h * ic        # weight H-slab
            + db * npad * tile_h * ic      # 2*prototype H-slab
            + db * 8 * npad * 4            # ||p||^2 row (sublane padded)
            + db * tile_q * npad * 4       # f32 output tile
            + tile_q * _LANE * 4)          # ||q||^2 scratch (lane padded)


def _pad2d(x, rows, cols, dtype):
    """Cast + zero-pad to (rows, cols); skipped entirely when already aligned."""
    x = x.astype(dtype)
    r, c = x.shape
    if (r, c) == (rows, cols):
        return x
    return jnp.pad(x, ((0, rows - r), (0, cols - c)))


def _fewshot_kernel(q_ref, w_ref, p2_ref, psq_ref, o_ref, qsq_ref):
    """One (query-tile, H-slab) grid step of the prototypical classifier.

    q_ref   : [tile_q, Dp]  query features (zero padded, compute dtype)
    w_ref   : [Dp, tile_h]  embedding-weight H-slab
    p2_ref  : [Np, tile_h]  2 * embedded class prototypes (precomputed H-slab)
    psq_ref : [1, Np]       ||prototype||^2 per class (f32, precomputed)
    o_ref   : [tile_q, Np]  f32 logits; accumulates 2*q.p across H slabs
    qsq_ref : [tile_q, 1]   f32 scratch; accumulates ||q||^2 across H slabs

    logits = 2*e_q.p - ||e_q||^2 - ||p||^2 = -||e_q - p||^2  (bias cancels).
    """
    h = pl.program_id(1)

    # Query embedding slab on the MXU, f32 accumulation.
    e_q = jnp.dot(q_ref[...], w_ref[...], preferred_element_type=jnp.float32)

    # Cross term: contract the LAST axis of both operands -> the MXU handles the
    # transposed contraction natively (no XLU relayout of the prototypes).
    cross = lax.dot_general(e_q.astype(p2_ref.dtype), p2_ref[...],
                            (((1,), (1,)), ((), ())),
                            preferred_element_type=jnp.float32)
    qsq = jnp.sum(e_q * e_q, axis=-1, keepdims=True)

    @pl.when(h == 0)
    def _init():
        o_ref[...] = cross
        qsq_ref[...] = qsq

    @pl.when(h != 0)
    def _accumulate():
        o_ref[...] = o_ref[...] + cross
        qsq_ref[...] = qsq_ref[...] + qsq

    @pl.when(h == pl.num_programs(1) - 1)
    def _finalize():
        o_ref[...] = o_ref[...] - qsq_ref[...] - psq_ref[...]


@functools.partial(jax.jit, static_argnames=("compute_dtype", "min_h_tiles"))
def fewshot_forward(queries, supports, w, b=None, *,
                    compute_dtype=jnp.bfloat16, min_h_tiles=1):
    """Mirror of FewshotSolver.forward(queries, *supports) -> logits [Q, N].

    queries: [Q, D]; supports: list of N arrays [K_c, D]; w: [D, H];
    b: [1, H] or None (the embedding bias cancels exactly in e_q - prototype).
    """
    del b  # mathematically irrelevant to the logits; accepted for API parity
    n_classes = len(supports)
    q, d = queries.shape
    d_w, h = w.shape
    assert d == d_w, (d, d_w)

    cdt = jnp.dtype(compute_dtype)
    ic = cdt.itemsize
    sublane = max(8, 32 // ic)  # 8 rows for f32, 16 for bf16 packing

    # Prototype hoist: averaging commutes with the linear embedding, so the
    # prototypes are embedded ONCE here (tiny XLA matmul) instead of being
    # re-embedded on every grid step.  Pre-scaled by 2 for the kernel epilogue.
    s_mean = jnp.stack([jnp.mean(s, axis=0) for s in supports]).astype(jnp.float32)
    protos = s_mean @ w.astype(jnp.float32)                    # [N, H] f32
    p_sq = jnp.sum(protos * protos, axis=-1)[None, :]          # [1, N] f32

    # ---- Padded / tiled geometry -------------------------------------------
    d_pad = _round_up(d, _LANE)
    n_pad = _round_up(n_classes, _LANE)          # lane-dense output columns
    h_pad0 = max(_round_up(h, _LANE), int(min_h_tiles) * _LANE)

    # Adaptive query tiling: limit pad waste, and >=2 tiles whenever Q allows
    # so the "parallel" axis can shard across v7x's two TensorCores.
    qp0 = _round_up(q, sublane)
    n_q = max(_cdiv(qp0, _MAX_TILE_Q), min(2, qp0 // sublane), 1)
    tile_q = _round_up(_cdiv(qp0, n_q), sublane)

    # H tiling: stream W / protos in [*, tile_h] slabs when the resident
    # working set would not fit the generation-aware VMEM budget.
    vmem_limit = _vmem_limit_bytes()
    budget = (vmem_limit * 4) // 5
    n_h = max(1, int(min_h_tiles))
    while True:
        tile_h = _round_up(_cdiv(h_pad0, n_h), _LANE)
        if (_est_vmem_bytes(tile_q, d_pad, tile_h, n_pad, ic) <= budget
                or tile_h == _LANE):
            break
        n_h += 1
    while (_est_vmem_bytes(tile_q, d_pad, tile_h, n_pad, ic) > budget
           and tile_q > sublane):
        tile_q = max(sublane, _round_up(tile_q // 2, sublane))
    h_pad = tile_h * n_h
    q_pad = _round_up(qp0, tile_q)
    n_q = q_pad // tile_q

    # ---- Pad operands (skipped when already aligned) ------------------------
    q_p = _pad2d(queries, q_pad, d_pad, cdt)
    w_p = _pad2d(w, d_pad, h_pad, cdt)
    p2_p = _pad2d(2.0 * protos, n_pad, h_pad, cdt)
    psq_p = _pad2d(p_sq, 1, n_pad, jnp.float32)

    flops = 2 * q_pad * d_pad * h_pad + 2 * q_pad * h_pad * n_pad
    w_passes = 1 if n_h == 1 else n_q          # resident W is fetched once
    bytes_accessed = (q_pad * d_pad * ic
                      + w_passes * (d_pad + n_pad) * h_pad * ic
                      + n_pad * 4 + q_pad * n_pad * 4)

    out = pl.pallas_call(
        _fewshot_kernel,
        out_shape=jax.ShapeDtypeStruct((q_pad, n_pad), jnp.float32),
        grid=(n_q, n_h),
        in_specs=[
            pl.BlockSpec((tile_q, d_pad), lambda i, hh: (i, 0)),
            pl.BlockSpec((d_pad, tile_h), lambda i, hh: (0, hh)),
            pl.BlockSpec((n_pad, tile_h), lambda i, hh: (0, hh)),
            pl.BlockSpec((1, n_pad), lambda i, hh: (0, 0)),
        ],
        out_specs=pl.BlockSpec((tile_q, n_pad), lambda i, hh: (i, 0)),
        scratch_shapes=[pltpu.VMEM((tile_q, 1), jnp.float32)],
        compiler_params=pltpu.CompilerParams(
            dimension_semantics=("parallel", "arbitrary"),
            vmem_limit_bytes=int(vmem_limit),
        ),
        cost_estimate=pl.CostEstimate(
            flops=int(flops), transcendentals=0,
            bytes_accessed=int(bytes_accessed)),
    )(q_p, w_p, p2_p, psq_p)

    return out[:q, :n_classes]


def _reference_forward(queries, supports, w, b):
    """Direct-difference f32 reference (includes the bias, which cancels)."""
    e_q = queries @ w + b                                                  # [Q, H]
    protos = jnp.stack([jnp.mean(s @ w + b, axis=0) for s in supports])    # [N, H]
    diff = e_q[:, None, :] - protos[None, :, :]
    return -jnp.sum(diff * diff, axis=-1)


if __name__ == "__main__":
    D, H = 32, 32
    N_CLASSES, K_SHOTS = 4, 5  # 4-way, 5-shot episode

    key = jax.random.PRNGKey(0)
    k_q, k_s, k_w, k_b, k_q2 = jax.random.split(key, 5)

    w = jax.random.normal(k_w, (D, H), dtype=jnp.float32) * (1.0 / jnp.sqrt(D))
    b = jax.random.normal(k_b, (1, H), dtype=jnp.float32) * 0.01
    supports = [
        jax.random.normal(jax.random.fold_in(k_s, c), (K_SHOTS, D), dtype=jnp.float32)
        for c in range(N_CLASSES)
    ]

    # 1) Default production path: bf16 MXU operands, f32 accumulation,
    #    resident weights (single H step).
    Q1 = 8
    q1 = jax.random.normal(k_q, (Q1, D), dtype=jnp.float32)
    out1 = jax.block_until_ready(fewshot_forward(q1, supports, w, b))
    ref1 = _reference_forward(q1, supports, w, b)
    assert out1.shape == (Q1, N_CLASSES), out1.shape
    assert jnp.allclose(out1, ref1, rtol=2e-2, atol=2e-1), (
        float(jnp.max(jnp.abs(out1 - ref1))))

    # 2) f32 path exercising the H-tiled reduction grid (the large-D*H fallback
    #    needed on v7x's 64 MiB VMEM) and a multi-tile "parallel" Q axis.
    Q2 = 40
    q2 = jax.random.normal(k_q2, (Q2, D), dtype=jnp.float32)
    out2 = jax.block_until_ready(
        fewshot_forward(q2, supports, w, b,
                        compute_dtype=jnp.float32, min_h_tiles=2))
    ref2 = _reference_forward(q2, supports, w, b)
    assert out2.shape == (Q2, N_CLASSES), out2.shape
    assert jnp.allclose(out2, ref2, rtol=1e-3, atol=1e-3), (
        float(jnp.max(jnp.abs(out2 - ref2))))

    print("KERNEL_OK")
</pallas_src>

<mosaic_0001>
module attributes {stable_mosaic.version = 11 : i64} {
  func.func @_fewshot_kernel(%arg0: i32, %arg1: i32, %arg2: memref<16x128xbf16, #tpu.memory_space<vmem>>, %arg3: memref<128x128xbf16, #tpu.memory_space<vmem>>, %arg4: memref<128x128xbf16, #tpu.memory_space<vmem>>, %arg5: memref<1x128xf32, #tpu.memory_space<vmem>>, %arg6: memref<16x128xf32, #tpu.memory_space<vmem>>, %arg7: memref<16x1xf32, #tpu.memory_space<vmem>>) attributes {dimension_semantics = [#tpu.dimension_semantics<parallel>, #tpu.dimension_semantics<arbitrary>], iteration_bounds = array<i64: 1, 1>, scalar_prefetch = 0 : i64, scratch_operands = 1 : i64, tpu.core_type = #tpu.core_type<tc>, window_params = [{transform_indices = @transform_0, window_bounds = array<i64: 16, 128>}, {transform_indices = @transform_1, window_bounds = array<i64: 128, 128>}, {transform_indices = @transform_2, window_bounds = array<i64: 128, 128>}, {pipeline_mode = #tpu.pipeline_mode<synchronous>, transform_indices = @transform_3, window_bounds = array<i64: 1, 128>}, {transform_indices = @transform_4, window_bounds = array<i64: 16, 128>}]} {
    %c0 = arith.constant 0 : index
    %c0_0 = arith.constant 0 : index
    %0 = vector.load %arg2[%c0, %c0_0] : memref<16x128xbf16, #tpu.memory_space<vmem>>, vector<16x128xbf16>
    %c0_1 = arith.constant 0 : index
    %c0_2 = arith.constant 0 : index
    %1 = vector.load %arg3[%c0_1, %c0_2] : memref<128x128xbf16, #tpu.memory_space<vmem>>, vector<128x128xbf16>
    %cst = arith.constant dense<0.000000e+00> : vector<16x128xf32>
    %2 = tpu.matmul %0, %1, %cst {dimension_numbers = #tpu.dot_dimension_numbers<[1], [0], [0], [1], [0, 0, 1, 1], [], []>} : vector<16x128xbf16>, vector<128x128xbf16>, vector<16x128xf32> -> vector<16x128xf32>
    %3 = arith.truncf %2 : vector<16x128xf32> to vector<16x128xbf16>
    %c0_3 = arith.constant 0 : index
    %c0_4 = arith.constant 0 : index
    %4 = vector.load %arg4[%c0_3, %c0_4] : memref<128x128xbf16, #tpu.memory_space<vmem>>, vector<128x128xbf16>
    %cst_5 = arith.constant dense<0.000000e+00> : vector<16x128xf32>
    %5 = tpu.matmul %3, %4, %cst_5 {dimension_numbers = #tpu.dot_dimension_numbers<[1], [1], [0], [0], [0, 0, 1, 0], [], []>} : vector<16x128xbf16>, vector<128x128xbf16>, vector<16x128xf32> -> vector<16x128xf32>
    %6 = arith.mulf %2, %2 : vector<16x128xf32>
    %cst_6 = arith.constant dense<0.000000e+00> : vector<16xf32>
    %7 = vector.multi_reduction <add>, %6, %cst_6 [1] : vector<16x128xf32> to vector<16xf32>
    %8 = vector.shape_cast %7 : vector<16xf32> to vector<16x1xf32>
    %c0_i32 = arith.constant 0 : i32
    %9 = arith.cmpi eq, %arg1, %c0_i32 : i32
    %10 = arith.extui %9 : i1 to i32
    %c0_i32_7 = arith.constant 0 : i32
    %11 = arith.cmpi ne, %10, %c0_i32_7 : i32
    scf.if %11 {
      %c0_12 = arith.constant 0 : index
      %c0_13 = arith.constant 0 : index
      %18 = vector.load %arg6[%c0_12, %c0_13] : memref<16x128xf32, #tpu.memory_space<vmem>>, vector<16x128xf32>
      tpu.vector_store %arg6[%c0_12, %c0_13], %5 {strides = array<i32>} : memref<16x128xf32, #tpu.memory_space<vmem>>, vector<16x128xf32>,
      %c0_14 = arith.constant 0 : index
      %c0_15 = arith.constant 0 : index
      %19 = vector.load %arg7[%c0_14, %c0_15] : memref<16x1xf32, #tpu.memory_space<vmem>>, vector<16x1xf32>
      tpu.vector_store %arg7[%c0_14, %c0_15], %8 {strides = array<i32>} : memref<16x1xf32, #tpu.memory_space<vmem>>, vector<16x1xf32>,
    } else {
    }
    %c0_i32_8 = arith.constant 0 : i32
    %12 = arith.cmpi ne, %arg1, %c0_i32_8 : i32
    %13 = arith.extui %12 : i1 to i32
    %c0_i32_9 = arith.constant 0 : i32
    %14 = arith.cmpi ne, %13, %c0_i32_9 : i32
    scf.if %14 {
      %c0_12 = arith.constant 0 : index
      %c0_13 = arith.constant 0 : index
      %18 = vector.load %arg6[%c0_12, %c0_13] : memref<16x128xf32, #tpu.memory_space<vmem>>, vector<16x128xf32>
      %19 = arith.addf %18, %5 : vector<16x128xf32>
      %c0_14 = arith.constant 0 : index
      %c0_15 = arith.constant 0 : index
      %20 = vector.load %arg6[%c0_14, %c0_15] : memref<16x128xf32, #tpu.memory_space<vmem>>, vector<16x128xf32>
      tpu.vector_store %arg6[%c0_14, %c0_15], %19 {strides = array<i32>} : memref<16x128xf32, #tpu.memory_space<vmem>>, vector<16x128xf32>,
      %c0_16 = arith.constant 0 : index
      %c0_17 = arith.constant 0 : index
      %21 = vector.load %arg7[%c0_16, %c0_17] : memref<16x1xf32, #tpu.memory_space<vmem>>, vector<16x1xf32>
      %22 = arith.addf %21, %8 : vector<16x1xf32>
      %c0_18 = arith.constant 0 : index
      %c0_19 = arith.constant 0 : index
      %23 = vector.load %arg7[%c0_18, %c0_19] : memref<16x1xf32, #tpu.memory_space<vmem>>, vector<16x1xf32>
      tpu.vector_store %arg7[%c0_18, %c0_19], %22 {strides = array<i32>} : memref<16x1xf32, #tpu.memory_space<vmem>>, vector<16x1xf32>,
    } else {
    }
    %c0_i32_10 = arith.constant 0 : i32
    %15 = arith.cmpi eq, %arg1, %c0_i32_10 : i32
    %16 = arith.extui %15 : i1 to i32
    %c0_i32_11 = arith.constant 0 : i32
    %17 = arith.cmpi ne, %16, %c0_i32_11 : i32
    scf.if %17 {
      %c0_12 = arith.constant 0 : index
      %c0_13 = arith.constant 0 : index
      %18 = vector.load %arg6[%c0_12, %c0_13] : memref<16x128xf32, #tpu.memory_space<vmem>>, vector<16x128xf32>
      %c0_14 = arith.constant 0 : index
      %c0_15 = arith.constant 0 : index
      %19 = vector.load %arg7[%c0_14, %c0_15] : memref<16x1xf32, #tpu.memory_space<vmem>>, vector<16x1xf32>
      %20 = vector.broadcast %19 : vector<16x1xf32> to vector<16x128xf32>
      %21 = arith.subf %18, %20 : vector<16x128xf32>
      %c0_16 = arith.constant 0 : index
      %c0_17 = arith.constant 0 : index
      %22 = vector.load %arg5[%c0_16, %c0_17] : memref<1x128xf32, #tpu.memory_space<vmem>>, vector<1x128xf32>
      %23 = vector.broadcast %22 : vector<1x128xf32> to vector<16x128xf32>
      %24 = arith.subf %21, %23 : vector<16x128xf32>
      %c0_18 = arith.constant 0 : index
      %c0_19 = arith.constant 0 : index
      %25 = vector.load %arg6[%c0_18, %c0_19] : memref<16x128xf32, #tpu.memory_space<vmem>>, vector<16x128xf32>
      tpu.vector_store %arg6[%c0_18, %c0_19], %24 {strides = array<i32>} : memref<16x128xf32, #tpu.memory_space<vmem>>, vector<16x128xf32>,
    } else {
    }
    return
  }
  func.func @transform_0(%arg0: i32, %arg1: i32) -> (i32, i32) {
    %c0_i32 = arith.constant 0 : i32
    %c0_i32_0 = arith.constant 0 : i32
    return %arg0, %c0_i32 : i32, i32
  }
  func.func @transform_1(%arg0: i32, %arg1: i32) -> (i32, i32) {
    %c0_i32 = arith.constant 0 : i32
    %c0_i32_0 = arith.constant 0 : i32
    return %c0_i32, %arg1 : i32, i32
  }
  func.func @transform_2(%arg0: i32, %arg1: i32) -> (i32, i32) {
    %c0_i32 = arith.constant 0 : i32
    %c0_i32_0 = arith.constant 0 : i32
    return %c0_i32, %arg1 : i32, i32
  }
  func.func @transform_3(%arg0: i32, %arg1: i32) -> (i32, i32) {
    %c0_i32 = arith.constant 0 : i32
    %c0_i32_0 = arith.constant 0 : i32
    %c0_i32_1 = arith.constant 0 : i32
    return %c0_i32, %c0_i32_0 : i32, i32
  }
  func.func @transform_4(%arg0: i32, %arg1: i32) -> (i32, i32) {
    %c0_i32 = arith.constant 0 : i32
    %c0_i32_0 = arith.constant 0 : i32
    return %arg0, %c0_i32 : i32, i32
  }
}

</mosaic_0001>

<bundles_post_ra>
// kernel: fewshot_forward.1
= control target key start
LH: loop header
LB: loop body
LE: loop exit
PB: predicated region body
PF: predicated region fallthrough
CT: control target
= control target key end

     0   :  { %v401_v0 = vmov 0.0   ;;  %vm402_vm0 = vmmov 0   ;;  %v403_v25 = vmov 0   ;;  %vm249_vm1 = vcmask 7168   ;;  %s489_s1 = inlined_call_operand.vmem [shape: bf16[128,128], index: 1, kind: input, shape index: {}]   ;;  %s490_s2 = inlined_call_operand.vmem [shape: bf16[128,128], index: 2, kind: input, shape index: {}]   ;;  %s491_s0 = inlined_call_operand.vmem [shape: bf16[16,128], index: 0, kind: input, shape index: {}]   ;;  %s492_s3 = inlined_call_operand.vmem [shape: f32[1,128], index: 3, kind: input, shape index: {}]   ;;  %s493_s4 = inlined_call_operand.vmem [shape: f32[16,128], index: 4, kind: output, shape index: {}]  }
   0x1   :  { %339 = vmatprep.subr.bf16.mxu0 %v401_v0  ;;  %v384_v1 = vld [vmem:[%s489_s1] sm:$0xff]   ;;  %355 = vmatprep.mubr.msk.bf16.mxu0 %vm402_vm0, %v401_v0  ;;  %v385_v2 = vld [vmem:[%s489_s1 + $0x8] sm:$0xff]   ;;  %v386_v3 = vld [vmem:[%s489_s1 + $0x10] sm:$0xff]  }
   0x2   :  { %359 = vmatprep.subr.bf16.mxu1 %v401_v0  ;;  %375 = vmatprep.mubr.msk.bf16.mxu1 %vm402_vm0, %v401_v0  ;;  %v393_v4 = vld [vmem:[%s490_s2] sm:$0xff]   ;;  %v387_v5 = vld [vmem:[%s489_s1 + $0x18] sm:$0xff]   ;;  %v394_v7 = vld [vmem:[%s490_s2 + $0x8] sm:$0xff]  }
   0x3   :  { %340 = vmatpush3.bf16.msra.mxu0 %v384_v1  ;;  %360 = vmatpush3.bf16.xpose.msra.mxu1 %v393_v4  ;;  %v388_v6 = vld [vmem:[%s489_s1 + $0x20] sm:$0xff]   ;;  %v389_v8 = vld [vmem:[%s489_s1 + $0x28] sm:$0xff]   ;;  %v390_v9 = vld [vmem:[%s489_s1 + $0x30] sm:$0xff]  }
   0x4   :  { %341 = vmatprep.subr.bf16.mxu0 %v401_v0  ;;  %361 = vmatprep.subr.bf16.mxu1 %v401_v0  ;;  %v395_v10 = vld [vmem:[%s490_s2 + $0x10] sm:$0xff]   ;;  %v391_v11 = vld [vmem:[%s489_s1 + $0x38] sm:$0xff]   ;;  %v392_v12 = vld [vmem:[%s491_s0] sm:$0xff]  }
   0x5   :  { %v396_v13 = vld [vmem:[%s490_s2 + $0x18] sm:$0xff]   ;;  %v397_v14 = vld [vmem:[%s490_s2 + $0x20] sm:$0xff]   ;;  %v398_v15 = vld [vmem:[%s490_s2 + $0x28] sm:$0xff]   ;;  %382 = vset.pattern.permute.xlu1 %v403_v25  ;;  %383 = vset.pattern.permute.xlu0 %v403_v25 }
   0x6   :  { %v399_v16 = vld [vmem:[%s490_s2 + $0x30] sm:$0xff]   ;;  %v400_v17 = vld [vmem:[%s490_s2 + $0x38] sm:$0xff]   ;;  %v320_v34 = vld [vmem:[%s492_s3] ss:$0 sm:$0xff] }
   0x7   :  { %342 = vmatpush3.bf16.msra.mxu0 %v385_v2 }
   0x8   :  { %343 = vmatprep.subr.bf16.mxu0 %v401_v0 }
   0xb   :  { %344 = vmatpush3.bf16.msra.mxu0 %v386_v3  ;;  %362 = vmatpush3.bf16.xpose.msra.mxu1 %v394_v7 }
   0xc   :  { %345 = vmatprep.subr.bf16.mxu0 %v401_v0  ;;  %363 = vmatprep.subr.bf16.mxu1 %v401_v0 }
   0xf   :  { %346 = vmatpush3.bf16.msra.mxu0 %v387_v5 }
  0x10   :  { %347 = vmatprep.subr.bf16.mxu0 %v401_v0 }
  0x13   :  { %348 = vmatpush3.bf16.msra.mxu0 %v388_v6  ;;  %364 = vmatpush3.bf16.xpose.msra.mxu1 %v395_v10 }
  0x14   :  { %349 = vmatprep.subr.bf16.mxu0 %v401_v0  ;;  %365 = vmatprep.subr.bf16.mxu1 %v401_v0 }
  0x17   :  { %350 = vmatpush3.bf16.msra.mxu0 %v389_v8 }
  0x18   :  { %351 = vmatprep.subr.bf16.mxu0 %v401_v0 }
  0x1b   :  { %352 = vmatpush3.bf16.msra.mxu0 %v390_v9  ;;  %366 = vmatpush3.bf16.xpose.msra.mxu1 %v396_v13 }
  0x1c   :  { %353 = vmatprep.subr.bf16.mxu0 %v401_v0  ;;  %367 = vmatprep.subr.bf16.mxu1 %v401_v0 }
  0x1f   :  { %354 = vmatpush3.bf16.msra.mxu0 %v391_v11 }
  0x22   :  { %356 = vmatmul.mubr.bf16.vlgmr.msra.gmra.mrb[0].mxu0 %v392_v12 }
  0x23   :  { %368 = vmatpush3.bf16.xpose.msra.mxu1 %v397_v14 }
  0x24   :  { %369 = vmatprep.subr.bf16.mxu1 %v401_v0 }
  0x2b   :  { %370 = vmatpush3.bf16.xpose.msra.mxu1 %v398_v15 }
  0x2c   :  { %371 = vmatprep.subr.bf16.mxu1 %v401_v0 }
  0x33   :  { %372 = vmatpush3.bf16.xpose.msra.mxu1 %v399_v16 }
  0x34   :  { %373 = vmatprep.subr.bf16.mxu1 %v401_v0 }
  0x3b   :  { %374 = vmatpush3.bf16.xpose.msra.mxu1 %v400_v17 }
  0xf5   :  { %v124_v18 = vpop.f32.mrb[0].mxu0 }
  0xf6   :  { %v357_v19 = vpop.f32.mrb[1].mxu0  ;;  %v237_v20 = vmul.f32 %v124_v18, %v124_v18 }
  0xf7   :  { %v127_v21 = vpop.f32.mrb[2].mxu0 }
  0xf8   :  { %v131_v22 = vpack.c.bf16 %v127_v21, %v124_v18  ;;  %239 = vadd.xlane.f32.xlu0 %v237_v20  ;;  %v358_v23 = vpop.f32.mrb[3].mxu0  ;;  %v238_v24 = vmul.f32 %v127_v21, %v127_v21 }
  0xfa   :  { %376 = vmatmul.mubr.bf16.vlgmr.msra.gmra.mrb[0].mxu1 %v131_v22 }
  0xfc   :  { %241 = vadd.xlane.f32.xlu0 %v238_v24 }
 0x185   :  { %v240_v26 = vpop.xlane.xlu0 %239 }
 0x186   :  { %250 = vst.msk [vmem:[#allocation2] sm:$0xff] %vm249_vm1, %v240_v26 }
 0x189   :  { %v242_v27 = vpop.xlane.xlu0 %241 }
 0x18a   :  { %251 = vst.msk [vmem:[#allocation2 + $0x8] sm:$0xff] %vm249_vm1, %v242_v27 }
 0x18d   :  { %v274_v28 = vld [vmem:[#allocation2] sm:$0xff] }
 0x18e   :  { %278 = vperm.xlu1 %382, %v274_v28  }
 0x191   :  { %v275_v29 = vld [vmem:[#allocation2 + $0x8] sm:$0xff] }
 0x192   :  { %283 = vperm.xlu1 %382, %v275_v29  }
 0x1cd   :  { %v230_v30 = vpop.f32.mrb[0].mxu1 }
 0x1ce   :  { %v377_v31 = vpop.f32.mrb[1].mxu1 }
 0x1cf   :  { %v233_v32 = vpop.f32.mrb[2].mxu1 }
 0x1d0   :  { %v378_v33 = vpop.f32.mrb[3].mxu1 }
 0x20d   :  { %v279_v35 = vpop.permute.xlu1 %278 }
 0x20e   :  { %v286_v36 = vsub.f32 %v230_v30, %v279_v35 }
 0x210   :  { %v295_v37 = vsub.f32 %v286_v36, %v320_v34 }
 0x211   :  { %v284_v38 = vpop.permute.xlu1 %283 }
 0x212   :  { %297 = vst [vmem:[%s493_s4] sm:$0xff] %v295_v37  ;;  %v287_v39 = vsub.f32 %v233_v32, %v284_v38 }
 0x214   :  { %v296_v40 = vsub.f32 %v287_v39, %v320_v34 }
 0x216   :  { %298 = vst [vmem:[%s493_s4 + $0x8] sm:$0xff] %v296_v40 }

</bundles_post_ra>
